<compile_context>
chip_gen: v6e
topology: v6e:2x2x1
jax: 0.10.0
libtpu: 0.0.40
codegen_flags: <defaults>
</compile_context>

<pallas_src>
import functools

import jax
import jax.numpy as jnp
from jax.experimental import pallas as pl
from jax.experimental.pallas import tpu as pltpu


def _round_up(v, m):
    return (v + m - 1) // m * m


def _unresample_kernel(sm_ref, x_ref, o_ref, acc_ref, *,
                       interp, h_in, w_in, tk_in):
    """One grid step: acc[bc_t, tn] += x[bc_t, tk] @ sel[tk, tn].

    sel is the slice of the sparse bilinear/nearest interpolation matrix for
    this (n_in tile, n_out tile) pair, built on the VPU from the sample-map
    block and reused by every row (all B*C images) of the x tile.
    """
    k = pl.program_id(2)

    @pl.when(k == 0)
    def _():
        acc_ref[...] = jnp.zeros_like(acc_ref)

    tn_out = o_ref.shape[1]
    tile_start = k * tk_in                      # element offset of this n_in tile

    sx = sm_ref[0:1, :]                         # (1, tn_out) x coords
    sy = sm_ref[1:2, :]                         # (1, tn_out) y coords

    iota = jax.lax.broadcasted_iota(jnp.int32, (tk_in, tn_out), 0)

    def corner_sel(ix, iy, w):
        # ix, iy: (1, tn_out) int32 ; w: (1, tn_out) f32
        valid = (ix >= 0) & (ix < w_in) & (iy >= 0) & (iy < h_in)
        w = jnp.where(valid, w, jnp.zeros_like(w))      # zero OOB corners
        lf = iy * w_in + ix - tile_start                # local flat index
        # one-hot scatter of the weight into this (tk_in, tn_out) sel block;
        # out-of-tile corners produce no match and contribute nothing here.
        return jnp.where(iota == lf, w, jnp.zeros_like(w))

    if interp == 0:  # nearest (round-half-up, matches floor(s + 0.5))
        ix = jnp.floor(sx + 0.5).astype(jnp.int32)
        iy = jnp.floor(sy + 0.5).astype(jnp.int32)
        sel = corner_sel(ix, iy, jnp.ones_like(sx))
    else:            # bilinear
        x0f = jnp.floor(sx)
        y0f = jnp.floor(sy)
        dx = sx - x0f
        dy = sy - y0f
        x0 = x0f.astype(jnp.int32)
        y0 = y0f.astype(jnp.int32)
        x1 = x0 + 1
        y1 = y0 + 1
        # TODO(synk): the suggested 4->2 compare reduction via
        # pltpu.roll(mask, 1, axis=0) mis-places/loses a corner whenever its
        # flat index lands on an n_in tile boundary, so the four explicit
        # one-hot builds are kept for correctness.
        sel = (corner_sel(x0, y0, (1.0 - dx) * (1.0 - dy))
               + corner_sel(x1, y0, dx * (1.0 - dy))
               + corner_sel(x0, y1, (1.0 - dx) * dy)
               + corner_sel(x1, y1, dx * dy))

    # Gather-as-matmul on the MXU: bf16 operands, f32 accumulation.
    acc_ref[...] += jnp.dot(x_ref[...], sel.astype(jnp.bfloat16),
                            preferred_element_type=jnp.float32)

    @pl.when(k == pl.num_programs(2) - 1)
    def _():
        o_ref[...] = acc_ref[...].astype(o_ref.dtype)


def unresample(x, sample_map, interpolation="bilinear", interp_weights=None,
               *, tn_out_max=512, tk_in_max=512, bc_tile_max=256):
    """Pallas equivalent of Unresample.forward (interp_weights path not supported)."""
    # TODO(synk): 'bispherical' interpolation and the interp_weights
    # (weighted_resample_from_map) path are not implemented.
    assert interp_weights is None
    interp = {"nearest": 0, "bilinear": 1}[interpolation]

    B, C, H_in, W_in = x.shape
    H_out, W_out, two = sample_map.shape
    assert two == 2

    bc = B * C
    n_in = H_in * W_in
    n_out = H_out * W_out

    # ---- tile sizes (bf16 x wants (16, 128)-aligned blocks; f32 out (8,128)).
    bc_pad = _round_up(bc, 16)
    bc_t = bc_pad if bc_pad <= bc_tile_max else bc_tile_max
    bc_pad = _round_up(bc_pad, bc_t)

    n_in_pad = _round_up(n_in, 128)
    tk = min(tk_in_max, n_in_pad)
    n_in_pad = _round_up(n_in_pad, tk)

    n_out_pad = _round_up(n_out, 128)
    tn = min(tn_out_max, n_out_pad)
    n_out_pad = _round_up(n_out_pad, tn)

    # ---- pad / reshape operands.
    x_flat = x.reshape(bc, n_in).astype(jnp.bfloat16)
    x_flat = jnp.pad(x_flat, ((0, bc_pad - bc), (0, n_in_pad - n_in)))

    # Padded sample-map columns get an out-of-bounds sentinel so all of their
    # interpolation weights are zeroed (no gather aliasing onto pixel (0, 0)).
    sm = sample_map.reshape(n_out, 2).T.astype(jnp.float32)       # (2, n_out)
    sm = jnp.pad(sm, ((0, 0), (0, n_out_pad - n_out)), constant_values=-1e6)

    grid = (bc_pad // bc_t, n_out_pad // tn, n_in_pad // tk)

    kernel = functools.partial(_unresample_kernel, interp=interp,
                               h_in=H_in, w_in=W_in, tk_in=tk)

    out = pl.pallas_call(
        kernel,
        out_shape=jax.ShapeDtypeStruct((bc_pad, n_out_pad), jnp.float32),
        grid_spec=pltpu.PrefetchScalarGridSpec(
            num_scalar_prefetch=0,
            grid=grid,
            in_specs=[
                pl.BlockSpec((2, tn), lambda b, i, k: (0, i)),
                pl.BlockSpec((bc_t, tk), lambda b, i, k: (b, k)),
            ],
            out_specs=pl.BlockSpec((bc_t, tn), lambda b, i, k: (b, i)),
            scratch_shapes=[pltpu.VMEM((bc_t, tn), jnp.float32)],
        ),
        compiler_params=pltpu.CompilerParams(
            dimension_semantics=("parallel", "parallel", "arbitrary")),
    )(sm, x_flat)

    return out[:bc, :n_out].reshape(B, C, H_out, W_out).astype(x.dtype)


# ----------------------------- references -----------------------------------


def _reference_bilinear(x, sample_map):
    """Pure-JAX bilinear reference (zero contribution from OOB corners)."""
    B, C, H, W = x.shape
    sx = sample_map[..., 0]
    sy = sample_map[..., 1]
    x0 = jnp.floor(sx).astype(jnp.int32)
    y0 = jnp.floor(sy).astype(jnp.int32)
    dx = sx - x0
    dy = sy - y0

    def gather(ix, iy, w):
        valid = (ix >= 0) & (ix < W) & (iy >= 0) & (iy < H)
        v = x[:, :, jnp.clip(iy, 0, H - 1), jnp.clip(ix, 0, W - 1)]
        return v * jnp.where(valid, w, 0.0)

    return (gather(x0, y0, (1 - dx) * (1 - dy))
            + gather(x0 + 1, y0, dx * (1 - dy))
            + gather(x0, y0 + 1, (1 - dx) * dy)
            + gather(x0 + 1, y0 + 1, dx * dy))


def _reference_nearest(x, sample_map):
    B, C, H, W = x.shape
    sx = sample_map[..., 0]
    sy = sample_map[..., 1]
    ix = jnp.floor(sx + 0.5).astype(jnp.int32)
    iy = jnp.floor(sy + 0.5).astype(jnp.int32)
    valid = (ix >= 0) & (ix < W) & (iy >= 0) & (iy < H)
    v = x[:, :, jnp.clip(iy, 0, H - 1), jnp.clip(ix, 0, W - 1)]
    return v * jnp.where(valid, 1.0, 0.0)


if __name__ == "__main__":
    key = jax.random.PRNGKey(0)
    k_x, k_sm = jax.random.split(key)

    B, C, H_in, W_in = 2, 4, 16, 16
    H_out, W_out = 8, 8

    x = jax.random.normal(k_x, (B, C, H_in, W_in), dtype=jnp.float32)
    # Real-valued (x, y) sample locations; some slightly outside the image to
    # exercise the out-of-bounds-corner masking.
    sample_map = jax.random.uniform(
        k_sm, (H_out, W_out, 2), dtype=jnp.float32,
        minval=-0.5, maxval=W_in - 0.5)

    out_bl = jax.block_until_ready(unresample(x, sample_map, "bilinear"))
    out_nn = jax.block_until_ready(unresample(x, sample_map, "nearest"))

    ref_bl = _reference_bilinear(x, sample_map)
    ref_nn = _reference_nearest(x, sample_map)

    assert out_bl.shape == (B, C, H_out, W_out)
    assert out_nn.shape == (B, C, H_out, W_out)
    # bf16 MXU operands carry ~3 decimal digits -> loosened tolerance.
    assert jnp.max(jnp.abs(out_bl - ref_bl)) < 5e-2, "bilinear mismatch vs. reference"
    assert jnp.max(jnp.abs(out_nn - ref_nn)) < 5e-2, "nearest mismatch vs. reference"

    print("KERNEL_OK")
</pallas_src>

<mosaic_0001>
module attributes {stable_mosaic.version = 11 : i64} {
  func.func @_unresample_kernel(%arg0: i32, %arg1: i32, %arg2: i32, %arg3: memref<2x128xf32, #tpu.memory_space<vmem>>, %arg4: memref<16x256xbf16, #tpu.memory_space<vmem>>, %arg5: memref<16x128xf32, #tpu.memory_space<vmem>>, %arg6: memref<16x128xf32, #tpu.memory_space<vmem>>) attributes {dimension_semantics = [#tpu.dimension_semantics<parallel>, #tpu.dimension_semantics<parallel>, #tpu.dimension_semantics<arbitrary>], iteration_bounds = array<i64: 1, 1, 1>, scalar_prefetch = 0 : i64, scratch_operands = 1 : i64, tpu.core_type = #tpu.core_type<tc>, window_params = [{transform_indices = @transform_0, window_bounds = array<i64: 2, 128>}, {transform_indices = @transform_1, window_bounds = array<i64: 16, 256>}, {transform_indices = @transform_2, window_bounds = array<i64: 16, 128>}]} {
    %c0_i32 = arith.constant 0 : i32
    %0 = arith.cmpi eq, %arg2, %c0_i32 : i32
    %1 = arith.extui %0 : i1 to i32
    %c0_i32_0 = arith.constant 0 : i32
    %2 = arith.cmpi ne, %1, %c0_i32_0 : i32
    scf.if %2 {
      %cst_43 = arith.constant 0.000000e+00 : f32
      %145 = vector.broadcast %cst_43 : f32 to vector<16x128xf32>
      %c0_44 = arith.constant 0 : index
      %c0_45 = arith.constant 0 : index
      %146 = vector.load %arg6[%c0_44, %c0_45] : memref<16x128xf32, #tpu.memory_space<vmem>>, vector<16x128xf32>
      tpu.vector_store %arg6[%c0_44, %c0_45], %145 {strides = array<i32>} : memref<16x128xf32, #tpu.memory_space<vmem>>, vector<16x128xf32>,
    } else {
    }
    %c256_i32 = arith.constant 256 : i32
    %3 = arith.muli %arg2, %c256_i32 : i32
    %c0 = arith.constant 0 : index
    %c0_1 = arith.constant 0 : index
    %4 = vector.load %arg3[%c0, %c0_1] : memref<2x128xf32, #tpu.memory_space<vmem>>, vector<1x128xf32>
    %c1 = arith.constant 1 : index
    %c0_2 = arith.constant 0 : index
    %5 = vector.load %arg3[%c1, %c0_2] : memref<2x128xf32, #tpu.memory_space<vmem>>, vector<1x128xf32>
    %6 = tpu.iota {dimensions = array<i32: 0>} : vector<256x128xi32>
    %7 = math.floor %4 : vector<1x128xf32>
    %8 = math.floor %5 : vector<1x128xf32>
    %9 = arith.subf %4, %7 : vector<1x128xf32>
    %10 = arith.subf %5, %8 : vector<1x128xf32>
    %11 = arith.fptosi %7 : vector<1x128xf32> to vector<1x128xi32>
    %12 = arith.fptosi %8 : vector<1x128xf32> to vector<1x128xi32>
    %c1_i32 = arith.constant 1 : i32
    %13 = vector.broadcast %c1_i32 : i32 to vector<1x128xi32>
    %14 = arith.addi %11, %13 : vector<1x128xi32>
    %c1_i32_3 = arith.constant 1 : i32
    %15 = vector.broadcast %c1_i32_3 : i32 to vector<1x128xi32>
    %16 = arith.addi %12, %15 : vector<1x128xi32>
    %cst = arith.constant 1.000000e+00 : f32
    %17 = vector.broadcast %cst : f32 to vector<1x128xf32>
    %18 = arith.subf %17, %9 : vector<1x128xf32>
    %cst_4 = arith.constant 1.000000e+00 : f32
    %19 = vector.broadcast %cst_4 : f32 to vector<1x128xf32>
    %20 = arith.subf %19, %10 : vector<1x128xf32>
    %21 = arith.mulf %18, %20 : vector<1x128xf32>
    %c0_i32_5 = arith.constant 0 : i32
    %22 = vector.broadcast %c0_i32_5 : i32 to vector<1x128xi32>
    %23 = arith.cmpi sge, %11, %22 : vector<1x128xi32>
    %c16_i32 = arith.constant 16 : i32
    %24 = vector.broadcast %c16_i32 : i32 to vector<1x128xi32>
    %25 = arith.cmpi slt, %11, %24 : vector<1x128xi32>
    %26 = arith.andi %23, %25 : vector<1x128xi1>
    %c0_i32_6 = arith.constant 0 : i32
    %27 = vector.broadcast %c0_i32_6 : i32 to vector<1x128xi32>
    %28 = arith.cmpi sge, %12, %27 : vector<1x128xi32>
    %29 = arith.andi %26, %28 : vector<1x128xi1>
    %c16_i32_7 = arith.constant 16 : i32
    %30 = vector.broadcast %c16_i32_7 : i32 to vector<1x128xi32>
    %31 = arith.cmpi slt, %12, %30 : vector<1x128xi32>
    %32 = arith.andi %29, %31 : vector<1x128xi1>
    %cst_8 = arith.constant 0.000000e+00 : f32
    %33 = vector.broadcast %cst_8 : f32 to vector<1x128xf32>
    %34 = arith.select %32, %21, %33 : vector<1x128xi1>, vector<1x128xf32>
    %c16_i32_9 = arith.constant 16 : i32
    %35 = vector.broadcast %c16_i32_9 : i32 to vector<1x128xi32>
    %36 = arith.muli %12, %35 : vector<1x128xi32>
    %37 = arith.addi %36, %11 : vector<1x128xi32>
    %38 = vector.broadcast %3 : i32 to vector<1x128xi32>
    %39 = arith.subi %37, %38 : vector<1x128xi32>
    %40 = vector.broadcast %39 : vector<1x128xi32> to vector<256x128xi32>
    %41 = arith.cmpi eq, %6, %40 : vector<256x128xi32>
    %cst_10 = arith.constant 0.000000e+00 : f32
    %42 = vector.broadcast %cst_10 : f32 to vector<1x128xf32>
    %43 = vector.shape_cast %34 : vector<1x128xf32> to vector<1x128xf32>
    %44 = vector.broadcast %43 : vector<1x128xf32> to vector<256x128xf32>
    %45 = vector.shape_cast %42 : vector<1x128xf32> to vector<1x128xf32>
    %46 = vector.broadcast %45 : vector<1x128xf32> to vector<256x128xf32>
    %47 = arith.select %41, %44, %46 : vector<256x128xi1>, vector<256x128xf32>
    %cst_11 = arith.constant 1.000000e+00 : f32
    %48 = vector.broadcast %cst_11 : f32 to vector<1x128xf32>
    %49 = arith.subf %48, %10 : vector<1x128xf32>
    %50 = arith.mulf %9, %49 : vector<1x128xf32>
    %c0_i32_12 = arith.constant 0 : i32
    %51 = vector.broadcast %c0_i32_12 : i32 to vector<1x128xi32>
    %52 = arith.cmpi sge, %14, %51 : vector<1x128xi32>
    %c16_i32_13 = arith.constant 16 : i32
    %53 = vector.broadcast %c16_i32_13 : i32 to vector<1x128xi32>
    %54 = arith.cmpi slt, %14, %53 : vector<1x128xi32>
    %55 = arith.andi %52, %54 : vector<1x128xi1>
    %c0_i32_14 = arith.constant 0 : i32
    %56 = vector.broadcast %c0_i32_14 : i32 to vector<1x128xi32>
    %57 = arith.cmpi sge, %12, %56 : vector<1x128xi32>
    %58 = arith.andi %55, %57 : vector<1x128xi1>
    %c16_i32_15 = arith.constant 16 : i32
    %59 = vector.broadcast %c16_i32_15 : i32 to vector<1x128xi32>
    %60 = arith.cmpi slt, %12, %59 : vector<1x128xi32>
    %61 = arith.andi %58, %60 : vector<1x128xi1>
    %cst_16 = arith.constant 0.000000e+00 : f32
    %62 = vector.broadcast %cst_16 : f32 to vector<1x128xf32>
    %63 = arith.select %61, %50, %62 : vector<1x128xi1>, vector<1x128xf32>
    %c16_i32_17 = arith.constant 16 : i32
    %64 = vector.broadcast %c16_i32_17 : i32 to vector<1x128xi32>
    %65 = arith.muli %12, %64 : vector<1x128xi32>
    %66 = arith.addi %65, %14 : vector<1x128xi32>
    %67 = vector.broadcast %3 : i32 to vector<1x128xi32>
    %68 = arith.subi %66, %67 : vector<1x128xi32>
    %69 = vector.broadcast %68 : vector<1x128xi32> to vector<256x128xi32>
    %70 = arith.cmpi eq, %6, %69 : vector<256x128xi32>
    %cst_18 = arith.constant 0.000000e+00 : f32
    %71 = vector.broadcast %cst_18 : f32 to vector<1x128xf32>
    %72 = vector.shape_cast %63 : vector<1x128xf32> to vector<1x128xf32>
    %73 = vector.broadcast %72 : vector<1x128xf32> to vector<256x128xf32>
    %74 = vector.shape_cast %71 : vector<1x128xf32> to vector<1x128xf32>
    %75 = vector.broadcast %74 : vector<1x128xf32> to vector<256x128xf32>
    %76 = arith.select %70, %73, %75 : vector<256x128xi1>, vector<256x128xf32>
    %77 = arith.addf %47, %76 : vector<256x128xf32>
    %cst_19 = arith.constant 1.000000e+00 : f32
    %78 = vector.broadcast %cst_19 : f32 to vector<1x128xf32>
    %79 = arith.subf %78, %9 : vector<1x128xf32>
    %80 = arith.mulf %79, %10 : vector<1x128xf32>
    %c0_i32_20 = arith.constant 0 : i32
    %81 = vector.broadcast %c0_i32_20 : i32 to vector<1x128xi32>
    %82 = arith.cmpi sge, %11, %81 : vector<1x128xi32>
    %c16_i32_21 = arith.constant 16 : i32
    %83 = vector.broadcast %c16_i32_21 : i32 to vector<1x128xi32>
    %84 = arith.cmpi slt, %11, %83 : vector<1x128xi32>
    %85 = arith.andi %82, %84 : vector<1x128xi1>
    %c0_i32_22 = arith.constant 0 : i32
    %86 = vector.broadcast %c0_i32_22 : i32 to vector<1x128xi32>
    %87 = arith.cmpi sge, %16, %86 : vector<1x128xi32>
    %88 = arith.andi %85, %87 : vector<1x128xi1>
    %c16_i32_23 = arith.constant 16 : i32
    %89 = vector.broadcast %c16_i32_23 : i32 to vector<1x128xi32>
    %90 = arith.cmpi slt, %16, %89 : vector<1x128xi32>
    %91 = arith.andi %88, %90 : vector<1x128xi1>
    %cst_24 = arith.constant 0.000000e+00 : f32
    %92 = vector.broadcast %cst_24 : f32 to vector<1x128xf32>
    %93 = arith.select %91, %80, %92 : vector<1x128xi1>, vector<1x128xf32>
    %c16_i32_25 = arith.constant 16 : i32
    %94 = vector.broadcast %c16_i32_25 : i32 to vector<1x128xi32>
    %95 = arith.muli %16, %94 : vector<1x128xi32>
    %96 = arith.addi %95, %11 : vector<1x128xi32>
    %97 = vector.broadcast %3 : i32 to vector<1x128xi32>
    %98 = arith.subi %96, %97 : vector<1x128xi32>
    %99 = vector.broadcast %98 : vector<1x128xi32> to vector<256x128xi32>
    %100 = arith.cmpi eq, %6, %99 : vector<256x128xi32>
    %cst_26 = arith.constant 0.000000e+00 : f32
    %101 = vector.broadcast %cst_26 : f32 to vector<1x128xf32>
    %102 = vector.shape_cast %93 : vector<1x128xf32> to vector<1x128xf32>
    %103 = vector.broadcast %102 : vector<1x128xf32> to vector<256x128xf32>
    %104 = vector.shape_cast %101 : vector<1x128xf32> to vector<1x128xf32>
    %105 = vector.broadcast %104 : vector<1x128xf32> to vector<256x128xf32>
    %106 = arith.select %100, %103, %105 : vector<256x128xi1>, vector<256x128xf32>
    %107 = arith.addf %77, %106 : vector<256x128xf32>
    %108 = arith.mulf %9, %10 : vector<1x128xf32>
    %c0_i32_27 = arith.constant 0 : i32
    %109 = vector.broadcast %c0_i32_27 : i32 to vector<1x128xi32>
    %110 = arith.cmpi sge, %14, %109 : vector<1x128xi32>
    %c16_i32_28 = arith.constant 16 : i32
    %111 = vector.broadcast %c16_i32_28 : i32 to vector<1x128xi32>
    %112 = arith.cmpi slt, %14, %111 : vector<1x128xi32>
    %113 = arith.andi %110, %112 : vector<1x128xi1>
    %c0_i32_29 = arith.constant 0 : i32
    %114 = vector.broadcast %c0_i32_29 : i32 to vector<1x128xi32>
    %115 = arith.cmpi sge, %16, %114 : vector<1x128xi32>
    %116 = arith.andi %113, %115 : vector<1x128xi1>
    %c16_i32_30 = arith.constant 16 : i32
    %117 = vector.broadcast %c16_i32_30 : i32 to vector<1x128xi32>
    %118 = arith.cmpi slt, %16, %117 : vector<1x128xi32>
    %119 = arith.andi %116, %118 : vector<1x128xi1>
    %cst_31 = arith.constant 0.000000e+00 : f32
    %120 = vector.broadcast %cst_31 : f32 to vector<1x128xf32>
    %121 = arith.select %119, %108, %120 : vector<1x128xi1>, vector<1x128xf32>
    %c16_i32_32 = arith.constant 16 : i32
    %122 = vector.broadcast %c16_i32_32 : i32 to vector<1x128xi32>
    %123 = arith.muli %16, %122 : vector<1x128xi32>
    %124 = arith.addi %123, %14 : vector<1x128xi32>
    %125 = vector.broadcast %3 : i32 to vector<1x128xi32>
    %126 = arith.subi %124, %125 : vector<1x128xi32>
    %127 = vector.broadcast %126 : vector<1x128xi32> to vector<256x128xi32>
    %128 = arith.cmpi eq, %6, %127 : vector<256x128xi32>
    %cst_33 = arith.constant 0.000000e+00 : f32
    %129 = vector.broadcast %cst_33 : f32 to vector<1x128xf32>
    %130 = vector.shape_cast %121 : vector<1x128xf32> to vector<1x128xf32>
    %131 = vector.broadcast %130 : vector<1x128xf32> to vector<256x128xf32>
    %132 = vector.shape_cast %129 : vector<1x128xf32> to vector<1x128xf32>
    %133 = vector.broadcast %132 : vector<1x128xf32> to vector<256x128xf32>
    %134 = arith.select %128, %131, %133 : vector<256x128xi1>, vector<256x128xf32>
    %135 = arith.addf %107, %134 : vector<256x128xf32>
    %c0_34 = arith.constant 0 : index
    %c0_35 = arith.constant 0 : index
    %136 = vector.load %arg6[%c0_34, %c0_35] : memref<16x128xf32, #tpu.memory_space<vmem>>, vector<16x128xf32>
    %c0_36 = arith.constant 0 : index
    %c0_37 = arith.constant 0 : index
    %137 = vector.load %arg4[%c0_36, %c0_37] : memref<16x256xbf16, #tpu.memory_space<vmem>>, vector<16x256xbf16>
    %138 = arith.truncf %135 : vector<256x128xf32> to vector<256x128xbf16>
    %cst_38 = arith.constant dense<0.000000e+00> : vector<16x128xf32>
    %139 = tpu.matmul %137, %138, %cst_38 {dimension_numbers = #tpu.dot_dimension_numbers<[1], [0], [0], [1], [0, 0, 1, 1], [], []>} : vector<16x256xbf16>, vector<256x128xbf16>, vector<16x128xf32> -> vector<16x128xf32>
    %140 = arith.addf %136, %139 : vector<16x128xf32>
    %c0_39 = arith.constant 0 : index
    %c0_40 = arith.constant 0 : index
    %141 = vector.load %arg6[%c0_39, %c0_40] : memref<16x128xf32, #tpu.memory_space<vmem>>, vector<16x128xf32>
    tpu.vector_store %arg6[%c0_39, %c0_40], %140 {strides = array<i32>} : memref<16x128xf32, #tpu.memory_space<vmem>>, vector<16x128xf32>,
    %c0_i32_41 = arith.constant 0 : i32
    %142 = arith.cmpi eq, %arg2, %c0_i32_41 : i32
    %143 = arith.extui %142 : i1 to i32
    %c0_i32_42 = arith.constant 0 : i32
    %144 = arith.cmpi ne, %143, %c0_i32_42 : i32
    scf.if %144 {
      %c0_43 = arith.constant 0 : index
      %c0_44 = arith.constant 0 : index
      %145 = vector.load %arg6[%c0_43, %c0_44] : memref<16x128xf32, #tpu.memory_space<vmem>>, vector<16x128xf32>
      %c0_45 = arith.constant 0 : index
      %c0_46 = arith.constant 0 : index
      %146 = vector.load %arg5[%c0_45, %c0_46] : memref<16x128xf32, #tpu.memory_space<vmem>>, vector<16x128xf32>
      tpu.vector_store %arg5[%c0_45, %c0_46], %145 {strides = array<i32>} : memref<16x128xf32, #tpu.memory_space<vmem>>, vector<16x128xf32>,
    } else {
    }
    return
  }
  func.func @transform_0(%arg0: i32, %arg1: i32, %arg2: i32) -> (i32, i32) {
    %c0_i32 = arith.constant 0 : i32
    %c0_i32_0 = arith.constant 0 : i32
    return %c0_i32, %arg1 : i32, i32
  }
  func.func @transform_1(%arg0: i32, %arg1: i32, %arg2: i32) -> (i32, i32) {
    %c0_i32 = arith.constant 0 : i32
    return %arg0, %arg2 : i32, i32
  }
  func.func @transform_2(%arg0: i32, %arg1: i32, %arg2: i32) -> (i32, i32) {
    %c0_i32 = arith.constant 0 : i32
    return %arg0, %arg1 : i32, i32
  }
}

</mosaic_0001>

<bundles_post_ra>
// kernel: tpu_custom_call.1
= control target key start
LH: loop header
LB: loop body
LE: loop exit
PB: predicated region body
PF: predicated region fallthrough
CT: control target
= control target key end

     0   :  { %7 = vsyncpa [#allocation4], 0  ;;  %s1295_s0 = inlined_call_operand.hbm [shape: f32[2,128], index: 0, kind: input, shape index: {}]   ;;  %s1296_s1 = inlined_call_operand.hbm [shape: bf16[16,256], index: 1, kind: input, shape index: {}]   ;;  %s1297_s2 = inlined_call_operand.hbm [shape: f32[16,128], index: 2, kind: output, shape index: {}]  }
   0x1   :  { %8 = vsyncpa [#allocation7], 0 }
   0x2   :  { %9 = vsyncpa [#allocation5], 0  ;;  %s714_s9 = smov [#allocation3]   ;;  %s715_s11 = smov [#allocation6]  }
   0x3   :  { %s16_s10 = sshll.u32 %s714_s9, 4  ;;  %s25_s12 = sshll.u32 %s715_s11, 4  ;;  %s17_s10 = int_to_ptr.vmem [resolvable:$true] %s16_s10  ;;  %s26_s12 = int_to_ptr.vmem [resolvable:$true] %s25_s12 }
   0x4   :  { %s656_s13 = scalar_lea.vmem %s17_s10, 32  ;;  %p661_p1 = scmp.lt.s32.totalorder %s17_s10, %s17_s10 }
   0x5   :  { %p657_p0 = scmp.ne.s32.totalorder %s17_s10, %s656_s13  ;;  %p662_p2 = scmp.lt.s32.totalorder %s656_s13, %s656_s13 }
   0x7   :  { %p663_p3 = por %p662_p2, %p661_p1 }
   0x9   :  { %p664_p4 = pnand %p663_p3, %p657_p0 }
   0xb   :  { %667 = shalt.err (!%p664_p4)
}
   0xc   :  { %19 = dma.hbm_to_vmem [thread:$0]  %s1295_s0, 32, %s17_s10, [#allocation4]  }
   0xd   :  { %s676_s16 = scalar_lea.vmem %s26_s12, 256  ;;  %p681_p6 = scmp.lt.s32.totalorder %s26_s12, %s26_s12 }
   0xe   :  { %p677_p5 = scmp.ne.s32.totalorder %s26_s12, %s676_s16  ;;  %p682_p7 = scmp.lt.s32.totalorder %s676_s16, %s676_s16 }
  0x10   :  { %p683_p8 = por %p682_p7, %p681_p6 }
  0x12   :  { %p684_p9 = pnand %p683_p8, %p677_p5 }
  0x14   :  { %687 = shalt.err (!%p684_p9)
}
  0x15   :  { %s716_s17 = smov 128   ;;  %s717_s18 = smov 8  }
  0x16   :  { %31 = dma.hbm_to_vmem [thread:$0]  %s1296_s1, 256, %s26_s12, [#allocation7], %s716_s17, %s716_s17, %s717_s18  }
  0x17   :  { %708 = dma.done.wait [#allocation4], 32  }
  0x18   :  { %709 = vsyncadd [#allocation4], 4294967264 }
  0x19   :  { %710 = dma.done.wait [#allocation7], 256  }
  0x1a   :  { %711 = vsyncadd [#allocation7], 4294967040  ;;  %v48_v0 = vlaneseq  ;;  %v46_v14 = vld [vmem:[#allocation3] sm:$0x1]  ;;  %v47_v15 = vld [vmem:[#allocation3 + $0x1] sm:$0x1] }
  0x1b   :  { %v81_v18 = vfloor.f32 %v46_v14  ;;  %v82_v19 = vfloor.f32 %v47_v15  ;;  %v647_v26 = vld [vmem:[#allocation6 + $0x4] ss:$8 sps:$4 sm:$0xff]   ;;  %s718_s0 = smov [#allocation8]  }
  0x1c   :  { %v743_v1 = vshrl.u32 %v48_v0, 7  ;;  %574 = vmatprep.mubr.bf16.mxu0 %v647_v26  ;;  %s599_s1 = sshll.u32 %s718_s0, 4  ;;  %s600_s1 = int_to_ptr.vmem [resolvable:$true] %s599_s1 }
  0x1d   :  { %v83_v27 = vsub.f32 %v46_v14, %v81_v18  ;;  %v84_v28 = vsub.f32 %v47_v15, %v82_v19  ;;  %v636_v29 = vtrunc.f32 %v81_v18  ;;  %v638_v30 = vtrunc.f32 %v82_v19  ;;  %s688_s21 = scalar_lea.vmem %s600_s1, 256  ;;  %p693_p11 = scmp.lt.s32.totalorder %s600_s1, %s600_s1 }
  0x1e   :  { %v746_v2 = vsub.s32 0, %v743_v1  ;;  %v749_v3 = vadd.s32 240, %v743_v1  ;;  %v752_v4 = vadd.s32 248, %v743_v1  ;;  %v755_v5 = vadd.s32 112, %v743_v1  ;;  %p689_p10 = scmp.ne.s32.totalorder %s600_s1, %s688_s21  ;;  %p694_p12 = scmp.lt.s32.totalorder %s688_s21, %s688_s21 }
  0x1f   :  { %v758_v6 = vadd.s32 120, %v743_v1  ;;  %v761_v7 = vadd.s32 224, %v743_v1  ;;  %v764_v8 = vadd.s32 232, %v743_v1  ;;  %v767_v9 = vadd.s32 96, %v743_v1 }
  0x20   :  { %v770_v10 = vadd.s32 104, %v743_v1  ;;  %v773_v11 = vadd.s32 208, %v743_v1  ;;  %v776_v12 = vadd.s32 216, %v743_v1  ;;  %v779_v13 = vadd.s32 80, %v743_v1  ;;  %p695_p13 = por %p694_p12, %p693_p11 }
  0x21   :  { %v782_v16 = vadd.s32 88, %v743_v1  ;;  %v785_v17 = vadd.s32 192, %v743_v1  ;;  %v788_v20 = vadd.s32 200, %v743_v1  ;;  %v791_v21 = vadd.s32 64, %v743_v1 }
  0x22   :  { %v794_v22 = vadd.s32 72, %v743_v1  ;;  %v797_v23 = vadd.s32 176, %v743_v1  ;;  %v800_v24 = vadd.s32 184, %v743_v1  ;;  %v803_v25 = vadd.s32 48, %v743_v1  ;;  %p696_p0 = pnand %p695_p13, %p689_p10 }
  0x23   :  { %v806_v31 = vadd.s32 56, %v743_v1  ;;  %v809_v32 = vadd.s32 160, %v743_v1  ;;  %v812_v33 = vadd.s32 168, %v743_v1  ;;  %v815_v34 = vadd.s32 32, %v743_v1 }
  0x24   :  { %v637_v35 = vcvt.f32.s32 %v636_v29  ;;  %v639_v36 = vcvt.f32.s32 %v638_v30  ;;  %v89_v37 = vsub.f32 1.0, %v83_v27  ;;  %v90_v38 = vsub.f32 1.0, %v84_v28 }
  0x25   :  { %v817_v39 = vmul.f32 %v84_v28, %v83_v27  ;;  %v820_v40 = vadd.s32 40, %v743_v1  ;;  %v823_v41 = vadd.s32 144, %v743_v1  ;;  %v826_v42 = vadd.s32 152, %v743_v1 }
  0x26   :  { %v87_v43 = vadd.s32 1, %v637_v35  ;;  %v88_v44 = vadd.s32 1, %v639_v36  ;;  %v91_v45 = vmul.f32 %v90_v38, %v89_v37  ;;  %vm92_vm0 = vcmp.ge.s32.totalorder %v637_v35, 0 }
  0x27   :  { %vm93_vm1 = vcmp.lt.s32.totalorder %v637_v35, 16  ;;  %vm95_vm2 = vcmp.ge.s32.totalorder %v639_v36, 0  ;;  %vm97_vm3 = vcmp.lt.s32.totalorder %v639_v36, 16  ;;  %v100_v46 = vmul.u32 16, %v639_v36 }
  0x28   :  { %vm828_vm4 = vmand %vm92_vm0, %vm93_vm1  ;;  %v176_v48 = vmul.f32 %v90_v38, %v83_v27  ;;  %vm177_vm5 = vcmp.ge.s32.totalorder %v87_v43, 0  ;;  %vm178_vm6 = vcmp.lt.s32.totalorder %v87_v43, 16  ;;  %v289_v49 = vmul.f32 %v89_v37, %v84_v28 }
  0x29   :  { %vm96_vm7 = vmand %vm828_vm4, %vm95_vm2  ;;  %v101_v50 = vadd.s32 %v637_v35, %v100_v46  ;;  %v183_v51 = vadd.s32 %v100_v46, %v87_v43  ;;  %vm290_vm8 = vcmp.ge.s32.totalorder %v88_v44, 0  ;;  %vm292_vm9 = vcmp.lt.s32.totalorder %v88_v44, 16 }
  0x2a   :  { %vm98_vm10 = vmand %vm96_vm7, %vm97_vm3  ;;  %v295_v52 = vmul.u32 16, %v88_v44  ;;  %v837_v53 = vadd.s32 16, %v743_v1  ;;  %v840_v54 = vadd.s32 24, %v743_v1  ;;  %v843_v55 = vadd.s32 128, %v743_v1 }
  0x2b   :  { %v99_v56 = vsel %vm98_vm10, %v91_v45, 0.0  ;;  %v846_v57 = vrot.slane %v101_v50, %v746_v2  ;;  %vm849_vm11 = vmand %vm177_vm5, %vm178_vm6  ;;  %v854_v59 = vrot.slane %v183_v51, %v746_v2  ;;  %v857_v60 = vadd.s32 136, %v743_v1 }
  0x2c   :  { %v860_v61 = vrot.slane %v99_v56, %v746_v2  ;;  %vm180_vm12 = vmand %vm849_vm11, %vm95_vm2  ;;  %v296_v62 = vadd.s32 %v637_v35, %v295_v52  ;;  %v406_v63 = vadd.s32 %v295_v52, %v87_v43  ;;  %v866_v0 = vadd.s32 8, %v743_v1 }
  0x2d   :  { %vm181_vm13 = vmand %vm180_vm12, %vm97_vm3  ;;  %vm138_vm14 = vcmp.eq.s32.totalorder %v749_v3, %v846_v57  ;;  %vm139_vm15 = vcmp.eq.s32.totalorder %v752_v4, %v846_v57  ;;  %vm219_vm0 = vcmp.eq.s32.totalorder %v749_v3, %v854_v59  ;;  %vm220_vm1 = vcmp.eq.s32.totalorder %v752_v4, %v854_v59 }
  0x2e   :  { %v182_v14 = vsel %vm181_vm13, %v176_v48, 0.0  ;;  %vm291_vm2 = vmand %vm828_vm4, %vm290_vm8  ;;  %v881_v15 = vrot.slane %v296_v62, %v746_v2  ;;  %v884_v18 = vrot.slane %v406_v63, %v746_v2  ;;  %v174_v19 = vsel %vm138_vm14, %v860_v61, 0.0 }
  0x2f   :  { %v888_v26 = vrot.slane %v182_v14, %v746_v2  ;;  %vm293_vm3 = vmand %vm291_vm2, %vm292_vm9  ;;  %v175_v27 = vsel %vm139_vm15, %v860_v61, 0.0  ;;  %vm122_vm5 = vcmp.eq.s32.totalorder %v755_v5, %v846_v57  ;;  %vm123_vm4 = vcmp.eq.s32.totalorder %v758_v6, %v846_v57 }
  0x30   :  { %v294_v28 = vsel %vm293_vm3, %v289_v49, 0.0  ;;  %vm403_vm6 = vmand %vm849_vm11, %vm290_vm8  ;;  %vm332_vm7 = vcmp.eq.s32.totalorder %v749_v3, %v881_v15  ;;  %vm333_vm10 = vcmp.eq.s32.totalorder %v752_v4, %v881_v15  ;;  %vm442_vm12 = vcmp.eq.s32.totalorder %v749_v3, %v884_v18 }
  0x31   :  { %v906_v29 = vrot.slane %v294_v28, %v746_v2  ;;  %vm404_vm13 = vmand %vm403_vm6, %vm292_vm9  ;;  %v255_v30 = vsel %vm219_vm0, %v888_v26, 0.0  ;;  %v256_v35 = vsel %vm220_vm1, %v888_v26, 0.0  ;;  %vm443_vm8 = vcmp.eq.s32.totalorder %v752_v4, %v884_v18 }
  0x32   :  { %v405_v36 = vsel %vm404_vm13, %v817_v39, 0.0  ;;  %v287_v37 = vadd.f32 %v255_v30, %v174_v19  ;;  %v288_v38 = vadd.f32 %v256_v35, %v175_v27  ;;  %v158_v43 = vsel %vm122_vm5, %v860_v61, 0.0 }
  0x33   :  { %v922_v44 = vrot.slane %v405_v36, %v746_v2  ;;  %v368_v45 = vsel %vm332_vm7, %v906_v29, 0.0  ;;  %v369_v46 = vsel %vm333_vm10, %v906_v29, 0.0  ;;  %v159_v47 = vsel %vm123_vm4, %v860_v61, 0.0 }
  0x34   :  { %v400_v48 = vadd.f32 %v368_v45, %v287_v37  ;;  %v401_v4 = vadd.f32 %v369_v46, %v288_v38  ;;  %vm203_vm9 = vcmp.eq.s32.totalorder %v755_v5, %v854_v59  ;;  %vm204_vm11 = vcmp.eq.s32.totalorder %v758_v6, %v854_v59 }
  0x35   :  { %v478_v2 = vsel %vm442_vm12, %v922_v44, 0.0  ;;  %v479_v39 = vsel %vm443_vm8, %v922_v44, 0.0  ;;  %v239_v49 = vsel %vm203_vm9, %v888_v26, 0.0  ;;  %v240_v50 = vsel %vm204_vm11, %v888_v26, 0.0 }
  0x36   :  { %v510_v51 = vadd.f32 %v478_v2, %v400_v48  ;;  %v511_v52 = vadd.f32 %v479_v39, %v401_v4  ;;  %v271_v56 = vadd.f32 %v239_v49, %v158_v43  ;;  %v272_v58 = vadd.f32 %v240_v50, %v159_v47 }
  0x37   :  { %vm316_vm14 = vcmp.eq.s32.totalorder %v755_v5, %v881_v15  ;;  %vm317_vm15 = vcmp.eq.s32.totalorder %v758_v6, %v881_v15  ;;  %vm426_vm0 = vcmp.eq.s32.totalorder %v755_v5, %v884_v18  ;;  %vm427_vm1 = vcmp.eq.s32.totalorder %v758_v6, %v884_v18 }
  0x38   :  { %v531_v3 = vpack.c.bf16 %v511_v52, %v510_v51  ;;  %v352_v62 = vsel %vm316_vm14, %v906_v29, 0.0  ;;  %v353_v63 = vsel %vm317_vm15, %v906_v29, 0.0  ;;  %v462_v14 = vsel %vm426_vm0, %v922_v44, 0.0 }
  0x39   :  { %v384_v19 = vadd.f32 %v352_v62, %v271_v56  ;;  %v385_v27 = vadd.f32 %v353_v63, %v272_v58  ;;  %v463_v28 = vsel %vm427_vm1, %v922_v44, 0.0  ;;  %vm136_vm2 = vcmp.eq.s32.totalorder %v761_v7, %v846_v57 }
  0x3a   :  { %614 = vmatprep.subr.bf16.mxu0 %v531_v3  ;;  %vm137_vm3 = vcmp.eq.s32.totalorder %v764_v8, %v846_v57  ;;  %v172_v5 = vsel %vm136_vm2, %v860_v61, 0.0  ;;  %vm217_vm5 = vcmp.eq.s32.totalorder %v761_v7, %v854_v59  ;;  %vm218_vm4 = vcmp.eq.s32.totalorder %v764_v8, %v854_v59 }
  0x3b   :  { %v494_v6 = vadd.f32 %v462_v14, %v384_v19  ;;  %v495_v30 = vadd.f32 %v463_v28, %v385_v27  ;;  %v173_v35 = vsel %vm137_vm3, %v860_v61, 0.0  ;;  %v253_v36 = vsel %vm217_vm5, %v888_v26, 0.0 }
  0x3c   :  { %v254_v37 = vsel %vm218_vm4, %v888_v26, 0.0  ;;  %v285_v38 = vadd.f32 %v253_v36, %v172_v5  ;;  %vm330_vm6 = vcmp.eq.s32.totalorder %v761_v7, %v881_v15  ;;  %vm331_vm7 = vcmp.eq.s32.totalorder %v764_v8, %v881_v15 }
  0x3d   :  { %v523_v43 = vpack.c.bf16 %v495_v30, %v494_v6  ;;  %v286_v45 = vadd.f32 %v254_v37, %v173_v35  ;;  %v366_v46 = vsel %vm330_vm6, %v906_v29, 0.0  ;;  %v367_v47 = vsel %vm331_vm7, %v906_v29, 0.0 }
  0x3e   :  { %v398_v48 = vadd.f32 %v366_v46, %v285_v38  ;;  %vm440_vm10 = vcmp.eq.s32.totalorder %v761_v7, %v884_v18  ;;  %vm441_vm12 = vcmp.eq.s32.totalorder %v764_v8, %v884_v18  ;;  %vm120_vm13 = vcmp.eq.s32.totalorder %v767_v9, %v846_v57 }
  0x3f   :  { %615 = vmatpush3.bf16.msra.mxu0 %v523_v43  ;;  %v399_v4 = vadd.f32 %v367_v47, %v286_v45  ;;  %v476_v2 = vsel %vm440_vm10, %v922_v44, 0.0  ;;  %v477_v39 = vsel %vm441_vm12, %v922_v44, 0.0  ;;  %vm121_vm8 = vcmp.eq.s32.totalorder %v770_v10, %v846_v57 }
  0x40   :  { %v508_v49 = vadd.f32 %v476_v2, %v398_v48  ;;  %v156_v50 = vsel %vm120_vm13, %v860_v61, 0.0  ;;  %v157_v7 = vsel %vm121_vm8, %v860_v61, 0.0  ;;  %vm201_vm9 = vcmp.eq.s32.totalorder %v767_v9, %v854_v59 }
  0x41   :  { %v509_v8 = vadd.f32 %v477_v39, %v399_v4  ;;  %vm202_vm11 = vcmp.eq.s32.totalorder %v770_v10, %v854_v59  ;;  %v237_v51 = vsel %vm201_vm9, %v888_v26, 0.0  ;;  %vm314_vm14 = vcmp.eq.s32.totalorder %v767_v9, %v881_v15 }
  0x42   :  { %v238_v52 = vsel %vm202_vm11, %v888_v26, 0.0  ;;  %v269_v56 = vadd.f32 %v237_v51, %v156_v50  ;;  %vm315_vm15 = vcmp.eq.s32.totalorder %v770_v10, %v881_v15  ;;  %v350_v58 = vsel %vm314_vm14, %v906_v29, 0.0 }
  0x43   :  { %v530_v3 = vpack.c.bf16 %v509_v8, %v508_v49  ;;  %v270_v62 = vadd.f32 %v238_v52, %v157_v7  ;;  %v351_v63 = vsel %vm315_vm15, %v906_v29, 0.0  ;;  %vm424_vm0 = vcmp.eq.s32.totalorder %v767_v9, %v884_v18 }
  0x44   :  { %v382_v14 = vadd.f32 %v350_v58, %v269_v56  ;;  %vm425_vm1 = vcmp.eq.s32.totalorder %v770_v10, %v884_v18  ;;  %v460_v19 = vsel %vm424_vm0, %v922_v44, 0.0  ;;  %vm134_vm2 = vcmp.eq.s32.totalorder %v773_v11, %v846_v57 }
  0x45   :  { %616 = vmatprep.subr.bf16.mxu0 %v530_v3  ;;  %v383_v27 = vadd.f32 %v351_v63, %v270_v62  ;;  %v461_v28 = vsel %vm425_vm1, %v922_v44, 0.0  ;;  %vm135_vm3 = vcmp.eq.s32.totalorder %v776_v12, %v846_v57  ;;  %v170_v5 = vsel %vm134_vm2, %v860_v61, 0.0 }
  0x46   :  { %v492_v6 = vadd.f32 %v460_v19, %v382_v14  ;;  %v171_v9 = vsel %vm135_vm3, %v860_v61, 0.0  ;;  %vm215_vm5 = vcmp.eq.s32.totalorder %v773_v11, %v854_v59  ;;  %vm216_vm4 = vcmp.eq.s32.totalorder %v776_v12, %v854_v59 }
  0x47   :  { %v493_v10 = vadd.f32 %v461_v28, %v383_v27  ;;  %v251_v30 = vsel %vm215_vm5, %v888_v26, 0.0  ;;  %v252_v35 = vsel %vm216_vm4, %v888_v26, 0.0  ;;  %vm328_vm6 = vcmp.eq.s32.totalorder %v773_v11, %v881_v15 }
  0x48   :  { %v283_v36 = vadd.f32 %v251_v30, %v170_v5  ;;  %v284_v37 = vadd.f32 %v252_v35, %v171_v9  ;;  %vm329_vm7 = vcmp.eq.s32.totalorder %v776_v12, %v881_v15  ;;  %v364_v38 = vsel %vm328_vm6, %v906_v29, 0.0 }
  0x49   :  { %v522_v43 = vpack.c.bf16 %v493_v10, %v492_v6  ;;  %v365_v45 = vsel %vm329_vm7, %v906_v29, 0.0  ;;  %vm438_vm10 = vcmp.eq.s32.totalorder %v773_v11, %v884_v18  ;;  %vm439_vm12 = vcmp.eq.s32.totalorder %v776_v12, %v884_v18 }
  0x4a   :  { %v396_v46 = vadd.f32 %v364_v38, %v283_v36  ;;  %v397_v47 = vadd.f32 %v365_v45, %v284_v37  ;;  %v474_v48 = vsel %vm438_vm10, %v922_v44, 0.0  ;;  %v475_v4 = vsel %vm439_vm12, %v922_v44, 0.0 }
  0x4b   :  { %617 = vmatpush3.bf16.msra.mxu0 %v522_v43  ;;  %vm118_vm13 = vcmp.eq.s32.totalorder %v779_v13, %v846_v57  ;;  %vm119_vm8 = vcmp.eq.s32.totalorder %v782_v16, %v846_v57  ;;  %vm199_vm9 = vcmp.eq.s32.totalorder %v779_v13, %v854_v59  ;;  %vm200_vm11 = vcmp.eq.s32.totalorder %v782_v16, %v854_v59 }
  0x4c   :  { %v506_v11 = vadd.f32 %v474_v48, %v396_v46  ;;  %v507_v12 = vadd.f32 %v475_v4, %v397_v47  ;;  %v154_v2 = vsel %vm118_vm13, %v860_v61, 0.0  ;;  %v155_v39 = vsel %vm119_vm8, %v860_v61, 0.0 }
  0x4d   :  { %v235_v49 = vsel %vm199_vm9, %v888_v26, 0.0  ;;  %v236_v50 = vsel %vm200_vm11, %v888_v26, 0.0  ;;  %vm312_vm14 = vcmp.eq.s32.totalorder %v779_v13, %v881_v15  ;;  %vm313_vm15 = vcmp.eq.s32.totalorder %v782_v16, %v881_v15 }
  0x4e   :  { %v529_v7 = vpack.c.bf16 %v507_v12, %v506_v11  ;;  %v267_v8 = vadd.f32 %v235_v49, %v154_v2  ;;  %v268_v51 = vadd.f32 %v236_v50, %v155_v39  ;;  %v348_v52 = vsel %vm312_vm14, %v906_v29, 0.0 }
  0x4f   :  { %v349_v56 = vsel %vm313_vm15, %v906_v29, 0.0  ;;  %vm422_vm0 = vcmp.eq.s32.totalorder %v779_v13, %v884_v18  ;;  %vm423_vm1 = vcmp.eq.s32.totalorder %v782_v16, %v884_v18  ;;  %vm132_vm2 = vcmp.eq.s32.totalorder %v785_v17, %v846_v57 }
  0x50   :  { %618 = vmatprep.subr.bf16.mxu0 %v529_v7  ;;  %v380_v58 = vadd.f32 %v348_v52, %v267_v8  ;;  %v381_v3 = vadd.f32 %v349_v56, %v268_v51  ;;  %v458_v62 = vsel %vm422_vm0, %v922_v44, 0.0  ;;  %v459_v63 = vsel %vm423_vm1, %v922_v44, 0.0 }
  0x51   :  { %vm133_vm3 = vcmp.eq.s32.totalorder %v788_v20, %v846_v57  ;;  %v168_v14 = vsel %vm132_vm2, %v860_v61, 0.0  ;;  %vm213_vm5 = vcmp.eq.s32.totalorder %v785_v17, %v854_v59  ;;  %vm214_vm4 = vcmp.eq.s32.totalorder %v788_v20, %v854_v59 }
  0x52   :  { %v490_v13 = vadd.f32 %v458_v62, %v380_v58  ;;  %v491_v16 = vadd.f32 %v459_v63, %v381_v3  ;;  %v169_v19 = vsel %vm133_vm3, %v860_v61, 0.0  ;;  %v249_v27 = vsel %vm213_vm5, %v888_v26, 0.0 }
  0x53   :  { %v250_v28 = vsel %vm214_vm4, %v888_v26, 0.0  ;;  %v281_v5 = vadd.f32 %v249_v27, %v168_v14  ;;  %vm326_vm6 = vcmp.eq.s32.totalorder %v785_v17, %v881_v15  ;;  %vm327_vm7 = vcmp.eq.s32.totalorder %v788_v20, %v881_v15 }
  0x54   :  { %v521_v6 = vpack.c.bf16 %v491_v16, %v490_v13  ;;  %v282_v9 = vadd.f32 %v250_v28, %v169_v19  ;;  %v362_v10 = vsel %vm326_vm6, %v906_v29, 0.0  ;;  %v363_v30 = vsel %vm327_vm7, %v906_v29, 0.0 }
  0x55   :  { %v394_v35 = vadd.f32 %v362_v10, %v281_v5  ;;  %vm436_vm10 = vcmp.eq.s32.totalorder %v785_v17, %v884_v18  ;;  %vm437_vm12 = vcmp.eq.s32.totalorder %v788_v20, %v884_v18  ;;  %vm116_vm13 = vcmp.eq.s32.totalorder %v791_v21, %v846_v57 }
  0x56   :  { %619 = vmatpush3.bf16.msra.mxu0 %v521_v6  ;;  %v395_v36 = vadd.f32 %v363_v30, %v282_v9  ;;  %v472_v37 = vsel %vm436_vm10, %v922_v44, 0.0  ;;  %v473_v38 = vsel %vm437_vm12, %v922_v44, 0.0  ;;  %vm117_vm8 = vcmp.eq.s32.totalorder %v794_v22, %v846_v57 }
  0x57   :  { %v504_v43 = vadd.f32 %v472_v37, %v394_v35  ;;  %v152_v45 = vsel %vm116_vm13, %v860_v61, 0.0  ;;  %v153_v17 = vsel %vm117_vm8, %v860_v61, 0.0  ;;  %vm197_vm9 = vcmp.eq.s32.totalorder %v791_v21, %v854_v59 }
  0x58   :  { %v505_v20 = vadd.f32 %v473_v38, %v395_v36  ;;  %vm198_vm11 = vcmp.eq.s32.totalorder %v794_v22, %v854_v59  ;;  %v233_v46 = vsel %vm197_vm9, %v888_v26, 0.0  ;;  %vm310_vm14 = vcmp.eq.s32.totalorder %v791_v21, %v881_v15 }
  0x59   :  { %v234_v47 = vsel %vm198_vm11, %v888_v26, 0.0  ;;  %v265_v48 = vadd.f32 %v233_v46, %v152_v45  ;;  %vm311_vm15 = vcmp.eq.s32.totalorder %v794_v22, %v881_v15  ;;  %v346_v4 = vsel %vm310_vm14, %v906_v29, 0.0 }
  0x5a   :  { %v528_v11 = vpack.c.bf16 %v505_v20, %v504_v43  ;;  %v266_v12 = vadd.f32 %v234_v47, %v153_v17  ;;  %v347_v2 = vsel %vm311_vm15, %v906_v29, 0.0  ;;  %vm420_vm0 = vcmp.eq.s32.totalorder %v791_v21, %v884_v18 }
  0x5b   :  { %v378_v39 = vadd.f32 %v346_v4, %v265_v48  ;;  %vm421_vm1 = vcmp.eq.s32.totalorder %v794_v22, %v884_v18  ;;  %v456_v49 = vsel %vm420_vm0, %v922_v44, 0.0  ;;  %vm130_vm2 = vcmp.eq.s32.totalorder %v797_v23, %v846_v57 }
  0x5c   :  { %620 = vmatprep.subr.bf16.mxu0 %v528_v11  ;;  %v379_v50 = vadd.f32 %v347_v2, %v266_v12  ;;  %v457_v7 = vsel %vm421_vm1, %v922_v44, 0.0  ;;  %vm131_vm3 = vcmp.eq.s32.totalorder %v800_v24, %v846_v57  ;;  %v166_v8 = vsel %vm130_vm2, %v860_v61, 0.0 }
  0x5d   :  { %v488_v51 = vadd.f32 %v456_v49, %v378_v39  ;;  %v167_v21 = vsel %vm131_vm3, %v860_v61, 0.0  ;;  %vm211_vm5 = vcmp.eq.s32.totalorder %v797_v23, %v854_v59  ;;  %vm212_vm4 = vcmp.eq.s32.totalorder %v800_v24, %v854_v59 }
  0x5e   :  { %v489_v22 = vadd.f32 %v457_v7, %v379_v50  ;;  %v247_v52 = vsel %vm211_vm5, %v888_v26, 0.0  ;;  %v248_v56 = vsel %vm212_vm4, %v888_v26, 0.0  ;;  %vm324_vm6 = vcmp.eq.s32.totalorder %v797_v23, %v881_v15 }
  0x5f   :  { %v279_v58 = vadd.f32 %v247_v52, %v166_v8  ;;  %v280_v3 = vadd.f32 %v248_v56, %v167_v21  ;;  %vm325_vm7 = vcmp.eq.s32.totalorder %v800_v24, %v881_v15  ;;  %v360_v62 = vsel %vm324_vm6, %v906_v29, 0.0 }
  0x60   :  { %v520_v63 = vpack.c.bf16 %v489_v22, %v488_v51  ;;  %v361_v14 = vsel %vm325_vm7, %v906_v29, 0.0  ;;  %vm434_vm10 = vcmp.eq.s32.totalorder %v797_v23, %v884_v18  ;;  %vm435_vm12 = vcmp.eq.s32.totalorder %v800_v24, %v884_v18 }
  0x61   :  { %v392_v13 = vadd.f32 %v360_v62, %v279_v58  ;;  %v393_v16 = vadd.f32 %v361_v14, %v280_v3  ;;  %v470_v19 = vsel %vm434_vm10, %v922_v44, 0.0  ;;  %v471_v27 = vsel %vm435_vm12, %v922_v44, 0.0 }
  0x62   :  { %621 = vmatpush3.bf16.msra.mxu0 %v520_v63  ;;  %vm114_vm13 = vcmp.eq.s32.totalorder %v803_v25, %v846_v57  ;;  %vm115_vm8 = vcmp.eq.s32.totalorder %v806_v31, %v846_v57  ;;  %vm195_vm9 = vcmp.eq.s32.totalorder %v803_v25, %v854_v59  ;;  %vm196_vm11 = vcmp.eq.s32.totalorder %v806_v31, %v854_v59 }
  0x63   :  { %v502_v23 = vadd.f32 %v470_v19, %v392_v13  ;;  %v503_v24 = vadd.f32 %v471_v27, %v393_v16  ;;  %v150_v28 = vsel %vm114_vm13, %v860_v61, 0.0  ;;  %v151_v5 = vsel %vm115_vm8, %v860_v61, 0.0 }
  0x64   :  { %v231_v6 = vsel %vm195_vm9, %v888_v26, 0.0  ;;  %v232_v9 = vsel %vm196_vm11, %v888_v26, 0.0  ;;  %vm308_vm14 = vcmp.eq.s32.totalorder %v803_v25, %v881_v15  ;;  %vm309_vm15 = vcmp.eq.s32.totalorder %v806_v31, %v881_v15 }
  0x65   :  { %v527_v10 = vpack.c.bf16 %v503_v24, %v502_v23  ;;  %v263_v30 = vadd.f32 %v231_v6, %v150_v28  ;;  %v264_v35 = vadd.f32 %v232_v9, %v151_v5  ;;  %v344_v36 = vsel %vm308_vm14, %v906_v29, 0.0 }
  0x66   :  { %v345_v37 = vsel %vm309_vm15, %v906_v29, 0.0  ;;  %vm418_vm0 = vcmp.eq.s32.totalorder %v803_v25, %v884_v18  ;;  %vm419_vm1 = vcmp.eq.s32.totalorder %v806_v31, %v884_v18  ;;  %vm128_vm2 = vcmp.eq.s32.totalorder %v809_v32, %v846_v57 }
  0x67   :  { %622 = vmatprep.subr.bf16.mxu0 %v527_v10  ;;  %v376_v38 = vadd.f32 %v344_v36, %v263_v30  ;;  %v377_v43 = vadd.f32 %v345_v37, %v264_v35  ;;  %v454_v45 = vsel %vm418_vm0, %v922_v44, 0.0  ;;  %v455_v17 = vsel %vm419_vm1, %v922_v44, 0.0 }
  0x68   :  { %vm129_vm3 = vcmp.eq.s32.totalorder %v812_v33, %v846_v57  ;;  %v164_v20 = vsel %vm128_vm2, %v860_v61, 0.0  ;;  %vm209_vm5 = vcmp.eq.s32.totalorder %v809_v32, %v854_v59  ;;  %vm210_vm4 = vcmp.eq.s32.totalorder %v812_v33, %v854_v59 }
  0x69   :  { %v486_v25 = vadd.f32 %v454_v45, %v376_v38  ;;  %v487_v31 = vadd.f32 %v455_v17, %v377_v43  ;;  %v165_v46 = vsel %vm129_vm3, %v860_v61, 0.0  ;;  %v245_v47 = vsel %vm209_vm5, %v888_v26, 0.0 }
  0x6a   :  { %v246_v48 = vsel %vm210_vm4, %v888_v26, 0.0  ;;  %v277_v4 = vadd.f32 %v245_v47, %v164_v20  ;;  %vm322_vm6 = vcmp.eq.s32.totalorder %v809_v32, %v881_v15  ;;  %vm323_vm7 = vcmp.eq.s32.totalorder %v812_v33, %v881_v15 }
  0x6b   :  { %v519_v11 = vpack.c.bf16 %v487_v31, %v486_v25  ;;  %v278_v12 = vadd.f32 %v246_v48, %v165_v46  ;;  %v358_v2 = vsel %vm322_vm6, %v906_v29, 0.0  ;;  %v359_v39 = vsel %vm323_vm7, %v906_v29, 0.0 }
  0x6c   :  { %v390_v49 = vadd.f32 %v358_v2, %v277_v4  ;;  %vm432_vm10 = vcmp.eq.s32.totalorder %v809_v32, %v884_v18  ;;  %vm433_vm12 = vcmp.eq.s32.totalorder %v812_v33, %v884_v18  ;;  %vm112_vm13 = vcmp.eq.s32.totalorder %v815_v34, %v846_v57 }
  0x6d   :  { %623 = vmatpush3.bf16.msra.mxu0 %v519_v11  ;;  %v391_v50 = vadd.f32 %v359_v39, %v278_v12  ;;  %v468_v7 = vsel %vm432_vm10, %v922_v44, 0.0  ;;  %v469_v8 = vsel %vm433_vm12, %v922_v44, 0.0  ;;  %vm113_vm8 = vcmp.eq.s32.totalorder %v820_v40, %v846_v57 }
  0x6e   :  { %v500_v51 = vadd.f32 %v468_v7, %v390_v49  ;;  %v148_v21 = vsel %vm112_vm13, %v860_v61, 0.0  ;;  %v149_v32 = vsel %vm113_vm8, %v860_v61, 0.0  ;;  %vm193_vm9 = vcmp.eq.s32.totalorder %v815_v34, %v854_v59 }
  0x6f   :  { %v501_v33 = vadd.f32 %v469_v8, %v391_v50  ;;  %vm194_vm11 = vcmp.eq.s32.totalorder %v820_v40, %v854_v59  ;;  %v229_v22 = vsel %vm193_vm9, %v888_v26, 0.0  ;;  %vm306_vm14 = vcmp.eq.s32.totalorder %v815_v34, %v881_v15 }
  0x70   :  { %v230_v52 = vsel %vm194_vm11, %v888_v26, 0.0  ;;  %v261_v56 = vadd.f32 %v229_v22, %v148_v21  ;;  %vm307_vm15 = vcmp.eq.s32.totalorder %v820_v40, %v881_v15  ;;  %v342_v58 = vsel %vm306_vm14, %v906_v29, 0.0 }
  0x71   :  { %v526_v3 = vpack.c.bf16 %v501_v33, %v500_v51  ;;  %v262_v62 = vadd.f32 %v230_v52, %v149_v32  ;;  %v343_v63 = vsel %vm307_vm15, %v906_v29, 0.0  ;;  %vm416_vm0 = vcmp.eq.s32.totalorder %v815_v34, %v884_v18 }
  0x72   :  { %v374_v14 = vadd.f32 %v342_v58, %v261_v56  ;;  %vm417_vm1 = vcmp.eq.s32.totalorder %v820_v40, %v884_v18  ;;  %v452_v13 = vsel %vm416_vm0, %v922_v44, 0.0  ;;  %vm126_vm2 = vcmp.eq.s32.totalorder %v823_v41, %v846_v57 }
  0x73   :  { %624 = vmatprep.subr.bf16.mxu0 %v526_v3  ;;  %v375_v16 = vadd.f32 %v343_v63, %v262_v62  ;;  %v453_v19 = vsel %vm417_vm1, %v922_v44, 0.0  ;;  %vm127_vm3 = vcmp.eq.s32.totalorder %v826_v42, %v846_v57  ;;  %v162_v27 = vsel %vm126_vm2, %v860_v61, 0.0 }
  0x74   :  { %v484_v23 = vadd.f32 %v452_v13, %v374_v14  ;;  %v163_v34 = vsel %vm127_vm3, %v860_v61, 0.0  ;;  %vm207_vm5 = vcmp.eq.s32.totalorder %v823_v41, %v854_v59  ;;  %vm208_vm4 = vcmp.eq.s32.totalorder %v826_v42, %v854_v59 }
  0x75   :  { %v485_v40 = vadd.f32 %v453_v19, %v375_v16  ;;  %v243_v24 = vsel %vm207_vm5, %v888_v26, 0.0  ;;  %v244_v28 = vsel %vm208_vm4, %v888_v26, 0.0  ;;  %vm320_vm6 = vcmp.eq.s32.totalorder %v823_v41, %v881_v15 }
  0x76   :  { %v275_v5 = vadd.f32 %v243_v24, %v162_v27  ;;  %v276_v6 = vadd.f32 %v244_v28, %v163_v34  ;;  %vm321_vm7 = vcmp.eq.s32.totalorder %v826_v42, %v881_v15  ;;  %v356_v9 = vsel %vm320_vm6, %v906_v29, 0.0  ;;  %v645_v24 = vld [vmem:[#allocation6] ss:$8 sps:$4 sm:$0xff]  }
  0x77   :  { %v518_v10 = vpack.c.bf16 %v485_v40, %v484_v23  ;;  %v357_v30 = vsel %vm321_vm7, %v906_v29, 0.0  ;;  %vm430_vm10 = vcmp.eq.s32.totalorder %v823_v41, %v884_v18  ;;  %vm431_vm12 = vcmp.eq.s32.totalorder %v826_v42, %v884_v18 }
  0x78   :  { %v388_v35 = vadd.f32 %v356_v9, %v275_v5  ;;  %v389_v36 = vadd.f32 %v357_v30, %v276_v6  ;;  %v466_v37 = vsel %vm430_vm10, %v922_v44, 0.0  ;;  %v467_v38 = vsel %vm431_vm12, %v922_v44, 0.0 }
  0x79   :  { %625 = vmatpush3.bf16.msra.mxu0 %v518_v10  ;;  %vm110_vm13 = vcmp.eq.s32.totalorder %v837_v53, %v846_v57  ;;  %vm111_vm8 = vcmp.eq.s32.totalorder %v840_v54, %v846_v57  ;;  %vm191_vm9 = vcmp.eq.s32.totalorder %v837_v53, %v854_v59  ;;  %vm192_vm11 = vcmp.eq.s32.totalorder %v840_v54, %v854_v59 }
  0x7a   :  { %v498_v41 = vadd.f32 %v466_v37, %v388_v35  ;;  %v499_v42 = vadd.f32 %v467_v38, %v389_v36  ;;  %v146_v43 = vsel %vm110_vm13, %v860_v61, 0.0  ;;  %v147_v45 = vsel %vm111_vm8, %v860_v61, 0.0 }
  0x7b   :  { %v227_v17 = vsel %vm191_vm9, %v888_v26, 0.0  ;;  %v228_v20 = vsel %vm192_vm11, %v888_v26, 0.0  ;;  %vm304_vm14 = vcmp.eq.s32.totalorder %v837_v53, %v881_v15  ;;  %vm305_vm15 = vcmp.eq.s32.totalorder %v840_v54, %v881_v15 }
  0x7c   :  { %v525_v25 = vpack.c.bf16 %v499_v42, %v498_v41  ;;  %v259_v31 = vadd.f32 %v227_v17, %v146_v43  ;;  %v260_v46 = vadd.f32 %v228_v20, %v147_v45  ;;  %v340_v47 = vsel %vm304_vm14, %v906_v29, 0.0 }
  0x7d   :  { %v341_v48 = vsel %vm305_vm15, %v906_v29, 0.0  ;;  %vm414_vm0 = vcmp.eq.s32.totalorder %v837_v53, %v884_v18  ;;  %vm415_vm1 = vcmp.eq.s32.totalorder %v840_v54, %v884_v18  ;;  %vm124_vm2 = vcmp.eq.s32.totalorder %v843_v55, %v846_v57 }
  0x7e   :  { %626 = vmatprep.subr.bf16.mxu0 %v525_v25  ;;  %v372_v4 = vadd.f32 %v340_v47, %v259_v31  ;;  %v373_v11 = vadd.f32 %v341_v48, %v260_v46  ;;  %v450_v12 = vsel %vm414_vm0, %v922_v44, 0.0  ;;  %v451_v2 = vsel %vm415_vm1, %v922_v44, 0.0 }
  0x7f   :  { %vm125_vm3 = vcmp.eq.s32.totalorder %v857_v60, %v846_v57  ;;  %v160_v39 = vsel %vm124_vm2, %v860_v61, 0.0  ;;  %vm205_vm5 = vcmp.eq.s32.totalorder %v843_v55, %v854_v59  ;;  %vm206_vm4 = vcmp.eq.s32.totalorder %v857_v60, %v854_v59 }
  0x80   :  { %v482_v53 = vadd.f32 %v450_v12, %v372_v4  ;;  %v483_v54 = vadd.f32 %v451_v2, %v373_v11  ;;  %v161_v49 = vsel %vm125_vm3, %v860_v61, 0.0  ;;  %v241_v50 = vsel %vm205_vm5, %v888_v26, 0.0 }
  0x81   :  { %v242_v7 = vsel %vm206_vm4, %v888_v26, 0.0  ;;  %v273_v8 = vadd.f32 %v241_v50, %v160_v39  ;;  %vm318_vm6 = vcmp.eq.s32.totalorder %v843_v55, %v881_v15  ;;  %vm319_vm7 = vcmp.eq.s32.totalorder %v857_v60, %v881_v15 }
  0x82   :  { %v517_v51 = vpack.c.bf16 %v483_v54, %v482_v53  ;;  %v274_v21 = vadd.f32 %v242_v7, %v161_v49  ;;  %v354_v32 = vsel %vm318_vm6, %v906_v29, 0.0  ;;  %v355_v33 = vsel %vm319_vm7, %v906_v29, 0.0 }
  0x83   :  { %v386_v22 = vadd.f32 %v354_v32, %v273_v8  ;;  %vm428_vm10 = vcmp.eq.s32.totalorder %v843_v55, %v884_v18  ;;  %vm429_vm12 = vcmp.eq.s32.totalorder %v857_v60, %v884_v18  ;;  %vm108_vm13 = vcmp.eq.s32.totalorder %v743_v1, %v846_v57 }
  0x84   :  { %627 = vmatpush3.bf16.msra.mxu0 %v517_v51  ;;  %v387_v52 = vadd.f32 %v355_v33, %v274_v21  ;;  %v464_v56 = vsel %vm428_vm10, %v922_v44, 0.0  ;;  %v465_v58 = vsel %vm429_vm12, %v922_v44, 0.0  ;;  %vm109_vm8 = vcmp.eq.s32.totalorder %v866_v0, %v846_v57 }
  0x85   :  { %v496_v3 = vadd.f32 %v464_v56, %v386_v22  ;;  %v144_v62 = vsel %vm108_vm13, %v860_v61, 0.0  ;;  %v145_v55 = vsel %vm109_vm8, %v860_v61, 0.0  ;;  %vm189_vm9 = vcmp.eq.s32.totalorder %v743_v1, %v854_v59 }
  0x86   :  { %v497_v60 = vadd.f32 %v465_v58, %v387_v52  ;;  %vm190_vm11 = vcmp.eq.s32.totalorder %v866_v0, %v854_v59  ;;  %v225_v63 = vsel %vm189_vm9, %v888_v26, 0.0  ;;  %vm302_vm14 = vcmp.eq.s32.totalorder %v743_v1, %v881_v15 }
  0x87   :  { %v226_v14 = vsel %vm190_vm11, %v888_v26, 0.0  ;;  %v257_v57 = vadd.f32 %v225_v63, %v144_v62  ;;  %vm303_vm15 = vcmp.eq.s32.totalorder %v866_v0, %v881_v15  ;;  %v338_v61 = vsel %vm302_vm14, %v906_v29, 0.0 }
  0x88   :  { %v524_v13 = vpack.c.bf16 %v497_v60, %v496_v3  ;;  %v258_v16 = vadd.f32 %v226_v14, %v145_v55  ;;  %v339_v19 = vsel %vm303_vm15, %v906_v29, 0.0  ;;  %vm412_vm0 = vcmp.eq.s32.totalorder %v743_v1, %v884_v18 }
  0x89   :  { %v370_v59 = vadd.f32 %v338_v61, %v257_v57  ;;  %vm413_vm1 = vcmp.eq.s32.totalorder %v866_v0, %v884_v18  ;;  %v448_v27 = vsel %vm412_vm0, %v922_v44, 0.0 }
  0x8a   :  { %628 = vmatprep.subr.bf16.mxu0 %v524_v13  ;;  %v371_v26 = vadd.f32 %v339_v19, %v258_v16  ;;  %v449_v23 = vsel %vm413_vm1, %v922_v44, 0.0 }
  0x8b   :  { %v480_v15 = vadd.f32 %v448_v27, %v370_v59 }
  0x8c   :  { %v481_v34 = vadd.f32 %v449_v23, %v371_v26 }
  0x8e   :  { %v516_v40 = vpack.c.bf16 %v481_v34, %v480_v15 }
  0x90   :  { %629 = vmatpush3.bf16.msra.mxu0 %v516_v40 }
  0x93   :  { %575 = vmatmul.mubr.bf16.vlgmr.msra.gmra.mxu0 %v645_v24 }
 0x153   :  { %v630_v29 = vpop.f32.mrf.mxu0 }
 0x155   :  { %v631_v28 = vpop.f32.mrf.mxu0 }
 0x156   :  { %v632_v5 = vadd.f32 %v631_v28, %v630_v29 }
 0x157   :  { %v633_v1 = vpop.f32.mrf.mxu0 }
 0x158   :  { %592 = vst [vmem:[#allocation8] sm:$0xff] %v632_v5 }
 0x159   :  { %v634_v0 = vpop.f32.mrf.mxu0 }
 0x15a   :  { %v635_v18 = vadd.f32 %v634_v0, %v633_v1 }
 0x15c   :  { %593 = vst [vmem:[#allocation8 + $0x8] sm:$0xff] %v635_v18 }
 0x15d   :  { %699 = shalt.err (!%p696_p0)
}
 0x15e   :  { %605 = dma.vmem_to_hbm [thread:$0]  %s600_s1, 256, %s1297_s2, [#allocation5], %s716_s17, %s716_s17, %s717_s18  }
 0x15f   :  { %712 = dma.done.wait [#allocation5], 256  }
 0x160   :  { %713 = vsyncadd [#allocation5], 4294967040 }
 0x161   :  { %609 = vsyncpa [#allocation4], 1 }
 0x162   :  { %610 = vsyncpa [#allocation7], 1 }
 0x163   :  { %611 = vsyncpa [#allocation5], 1 }

</bundles_post_ra>
